<compile_context>
chip_gen: v5e
topology: v5e:2x2
jax: 0.10.0
libtpu: 0.0.40
codegen_flags: <defaults>
</compile_context>

<pallas_src>
import jax
import jax.numpy as jnp
from jax.experimental import pallas as pl
from jax.experimental.pallas import tpu as pltpu


def _gate_kernel(cov_ref, scale_ref, x_ref, o_ref):
    # cov_ref:   (1, 1, TILE_S)       f32 coverage in {0,1} (1 => dropped), channel indep.
    # scale_ref: (1, 1)               f32 numel / sum(block_mask), in SMEM
    # x_ref:     (1, TILE_C, TILE_S)  input tile (lane-dense last dim)
    # o_ref:     (1, TILE_C, TILE_S)  output tile
    scale = scale_ref[0, 0]
    gate = (1.0 - cov_ref[0]) * scale                # (1, TILE_S) f32
    o_ref[0] = (x_ref[0] * gate).astype(o_ref.dtype)


def _block_coverage_3d(mask, block_size, out_dhw):
    """(conv3d(mask, ones(bs^3), pad=bs//2+1) cropped) >= 1, via a separable window max.

    Exact for a {0,1} mask: conv-with-ones >= 1  <=>  3-D window max == 1, and the
    cubic window max factors into three sequential 1-D maxes (3*bs compares per
    element instead of bs^3).  mask: (B, md, mh, mw) f32 -> (B, D, H, W) f32 in {0,1}.
    """
    D, H, W = out_dhw
    lo = block_size // 2 + 1          # left pad used by the PyTorch conv
    hi = max(block_size - 2, 0)       # right pad needed to cover the trailing crop
    cov = mask
    for axis in (1, 2, 3):
        wdims = [1, 1, 1, 1]
        wdims[axis] = block_size
        pad = [(0, 0)] * 4
        pad[axis] = (lo, hi)
        cov = jax.lax.reduce_window(
            cov, 0.0, jax.lax.max,
            window_dimensions=tuple(wdims),
            window_strides=(1, 1, 1, 1),
            padding=pad)
    return cov[:, :D, :H, :W]


def _choose_tiles(B, C, S):
    """Lane-dense, VMEM-safe tiles with enough grid steps for megacore/pipelining."""
    MAX_TILE_S = 4096   # (1,128,4096) f32 in+out, double-buffered ~= 8 MiB: fits the
    MAX_TILE_C = 128    # scoped-VMEM defaults on v5e (16 MiB) and v6e/v7x (32 MiB).

    # Lane axis: multiple of 128 (unmasked vst) or the full extent as a fallback.
    if S % 128 == 0:
        tile_s = min(S, MAX_TILE_S)
    else:
        tile_s = S  # TODO(synk): re-flatten (keep H*W on lanes) when S is not 128-aligned.
    # Sublane/channel axis: multiple of 8 or the full extent.
    if C % 8 == 0:
        tile_c = min(C, MAX_TILE_C)
    else:
        tile_c = C

    def steps(ts, tc):
        return B * pl.cdiv(S, ts) * pl.cdiv(C, tc)

    # Aim for >= 8 grid steps (pipelining + both v7x TCs) without going below 512 lanes...
    while steps(tile_s, tile_c) < 8 and tile_s > 512 and tile_s % 256 == 0:
        tile_s //= 2
    # ...but never leave a single-step grid (one idle v7x TensorCore, no DMA overlap).
    while steps(tile_s, tile_c) < 2 and tile_s > 128 and tile_s % 256 == 0:
        tile_s //= 2
    return tile_s, tile_c


def dropblock3d(x, key, *, drop_prob, block_size, training=True, donate_x=False):
    """Forward of DropBlock3D.  x: (B, C, D, H, W).  Returns (out, bernoulli_mask)."""
    assert x.ndim == 5, (
        "Expected input with 5 dimensions (bsize, channels, depth, height, width)")
    if (not training) or drop_prob == 0.0:
        return x, None
    if block_size - block_size // 2 > 3:
        # The reference PyTorch module's conv/crop arithmetic breaks for block_size >= 7
        # (negative crop); mirror that restriction explicitly instead of silently diverging.
        raise ValueError(f"block_size {block_size} is not supported by DropBlock3D")

    B, C, D, H, W = x.shape
    delta = block_size // 2
    md, mh, mw = D - delta, H - delta, W - delta
    if md <= 0 or mh <= 0 or mw <= 0:
        raise ValueError(
            f"Input of shape {tuple(x.shape)} is too small for block_size {block_size}")

    # gamma = drop_prob / bs^3 * (feat_volume / mask_volume)
    gamma = drop_prob / (block_size ** 3) * ((D * H * W) / (md * mh * mw))
    mask = jax.random.bernoulli(key, gamma, (B, md, mh, mw)).astype(jnp.float32)

    # Channel-independent coverage (plain-JAX prologue, ~1/C of the HBM traffic).
    cov = _block_coverage_3d(mask, block_size, (D, H, W))      # (B, D, H, W) in {0,1}
    total = float(B * D * H * W)
    # scale = numel / sum(block_mask); matches PyTorch (inf if every position covered).
    scale = jnp.float32(total) / (jnp.float32(total) - jnp.sum(cov))
    scale_arr = jnp.reshape(scale, (1, 1)).astype(jnp.float32)

    S = D * H * W
    cov_flat = cov.reshape(B, 1, S)        # fed raw; (1 - cov) * scale happens in-kernel
    x_flat = x.reshape(B, C, S)

    tile_s, tile_c = _choose_tiles(B, C, S)
    # Channel tiles innermost: the (1,1,tile_s) coverage block index is unchanged across
    # the inner loop, so Pallas elides its re-DMA.
    grid = (B, pl.cdiv(S, tile_s), pl.cdiv(C, tile_c))

    out_flat = pl.pallas_call(
        _gate_kernel,
        out_shape=jax.ShapeDtypeStruct((B, C, S), x.dtype),
        grid_spec=pltpu.PrefetchScalarGridSpec(
            num_scalar_prefetch=0,
            grid=grid,
            in_specs=[
                pl.BlockSpec((1, 1, tile_s), lambda b, s, c: (b, 0, s)),
                pl.BlockSpec(memory_space=pltpu.MemorySpace.SMEM),
                pl.BlockSpec((1, tile_c, tile_s), lambda b, s, c: (b, c, s)),
            ],
            out_specs=pl.BlockSpec((1, tile_c, tile_s), lambda b, s, c: (b, c, s)),
        ),
        compiler_params=pltpu.CompilerParams(
            dimension_semantics=("parallel", "parallel", "parallel")),
        input_output_aliases=({2: 0} if donate_x else {}),
    )(cov_flat, scale_arr, x_flat)
    return out_flat.reshape(B, C, D, H, W), mask


def _reference(x, mask, *, block_size):
    """Pure-JAX replica of the PyTorch DropBlock3D forward, given the same mask."""
    B, C, D, H, W = x.shape
    p = block_size // 2 + 1
    kern = jnp.ones((1, 1, block_size, block_size, block_size), jnp.float32)
    bm = jax.lax.conv_general_dilated(
        mask[:, None], kern, window_strides=(1, 1, 1),
        padding=[(p, p), (p, p), (p, p)],
        dimension_numbers=("NCDHW", "OIDHW", "NCDHW"))
    bm = bm[:, :, :D, :H, :W]                       # trailing crop, as in PyTorch
    block_mask = 1.0 - (bm >= 1).astype(jnp.float32)[:, 0]
    out = x * block_mask[:, None]
    return out * block_mask.size / jnp.sum(block_mask)


if __name__ == "__main__":
    drop_prob, block_size = 0.2, 3
    B, C, D, H, W = 2, 4, 8, 8, 8

    key = jax.random.PRNGKey(0)
    kx, km = jax.random.split(key)
    x = jax.random.normal(kx, (B, C, D, H, W), dtype=jnp.float32)

    out, mask = dropblock3d(x, km, drop_prob=drop_prob,
                            block_size=block_size, training=True)
    out = jax.block_until_ready(out)

    ref = _reference(x, mask, block_size=block_size)
    assert out.shape == x.shape and out.dtype == x.dtype
    assert jnp.allclose(out, ref, atol=1e-5, rtol=1e-5), "mismatch vs reference"

    print("KERNEL_OK")
</pallas_src>

<mosaic_0001>
module attributes {stable_mosaic.version = 11 : i64} {
  func.func @_gate_kernel(%arg0: i32, %arg1: i32, %arg2: i32, %arg3: memref<1x1x512xf32, #tpu.memory_space<vmem>>, %arg4: memref<1x1xf32, #tpu.memory_space<smem>>, %arg5: memref<1x4x512xf32, #tpu.memory_space<vmem>>, %arg6: memref<1x4x512xf32, #tpu.memory_space<vmem>>) attributes {dimension_semantics = [#tpu.dimension_semantics<parallel>, #tpu.dimension_semantics<parallel>, #tpu.dimension_semantics<parallel>], iteration_bounds = array<i64: 2, 1, 1>, scalar_prefetch = 0 : i64, scratch_operands = 0 : i64, tpu.core_type = #tpu.core_type<tc>, window_params = [{transform_indices = @transform_0, window_bounds = array<i64: 1, 1, 512>}, {transform_indices = @transform_1, window_bounds = array<i64: 1, 1>}, {transform_indices = @transform_2, window_bounds = array<i64: 1, 4, 512>}, {transform_indices = @transform_3, window_bounds = array<i64: 1, 4, 512>}]} {
    %c0 = arith.constant 0 : index
    %c0_0 = arith.constant 0 : index
    %0 = memref.load %arg4[%c0, %c0_0] : memref<1x1xf32, #tpu.memory_space<smem>>
    %c0_1 = arith.constant 0 : index
    %c0_2 = arith.constant 0 : index
    %c0_3 = arith.constant 0 : index
    %1 = vector.load %arg3[%c0_1, %c0_2, %c0_3] : memref<1x1x512xf32, #tpu.memory_space<vmem>>, vector<1x1x512xf32>
    %2 = vector.shape_cast %1 : vector<1x1x512xf32> to vector<1x512xf32>
    %cst = arith.constant 1.000000e+00 : f32
    %3 = vector.broadcast %cst : f32 to vector<1x512xf32>
    %4 = arith.subf %3, %2 : vector<1x512xf32>
    %5 = vector.broadcast %0 : f32 to vector<1x512xf32>
    %6 = arith.mulf %4, %5 : vector<1x512xf32>
    %c0_4 = arith.constant 0 : index
    %c0_5 = arith.constant 0 : index
    %c0_6 = arith.constant 0 : index
    %7 = vector.load %arg5[%c0_4, %c0_5, %c0_6] : memref<1x4x512xf32, #tpu.memory_space<vmem>>, vector<1x4x512xf32>
    %8 = vector.shape_cast %7 : vector<1x4x512xf32> to vector<4x512xf32>
    %9 = vector.broadcast %6 : vector<1x512xf32> to vector<4x512xf32>
    %10 = arith.mulf %8, %9 : vector<4x512xf32>
    %c0_7 = arith.constant 0 : index
    %c0_8 = arith.constant 0 : index
    %c0_9 = arith.constant 0 : index
    %11 = vector.load %arg6[%c0_7, %c0_8, %c0_9] : memref<1x4x512xf32, #tpu.memory_space<vmem>>, vector<1x4x512xf32>
    %12 = vector.shape_cast %11 : vector<1x4x512xf32> to vector<4x512xf32>
    %13 = vector.shape_cast %10 : vector<4x512xf32> to vector<1x4x512xf32>
    tpu.vector_store %arg6[%c0_7, %c0_8, %c0_9], %13 {strides = array<i32>} : memref<1x4x512xf32, #tpu.memory_space<vmem>>, vector<1x4x512xf32>,
    return
  }
  func.func @transform_0(%arg0: i32, %arg1: i32, %arg2: i32) -> (i32, i32, i32) {
    %c0_i32 = arith.constant 0 : i32
    %c0_i32_0 = arith.constant 0 : i32
    return %arg0, %c0_i32, %arg1 : i32, i32, i32
  }
  func.func @transform_1(%arg0: i32, %arg1: i32, %arg2: i32) -> (i32, i32) {
    %c0_i32 = arith.constant 0 : i32
    %c0_i32_0 = arith.constant 0 : i32
    %c0_i32_1 = arith.constant 0 : i32
    return %c0_i32, %c0_i32_0 : i32, i32
  }
  func.func @transform_2(%arg0: i32, %arg1: i32, %arg2: i32) -> (i32, i32, i32) {
    %c0_i32 = arith.constant 0 : i32
    return %arg0, %arg2, %arg1 : i32, i32, i32
  }
  func.func @transform_3(%arg0: i32, %arg1: i32, %arg2: i32) -> (i32, i32, i32) {
    %c0_i32 = arith.constant 0 : i32
    return %arg0, %arg2, %arg1 : i32, i32, i32
  }
}

</mosaic_0001>

<bundles_post_ra>
// kernel: tpu_custom_call.1
= control target key start
LH: loop header
LB: loop body
LE: loop exit
PB: predicated region body
PF: predicated region fallthrough
CT: control target
= control target key end

     0   :  { %s823_s0 = inlined_call_operand.hbm [shape: f32[2,1,512], index: 0, kind: input, shape index: {}]   ;;  %s824_s1 = inlined_call_operand.<no memory space> [shape: f32[1,1], index: 1, kind: input, shape index: {}]   ;;  %s825_s2 = inlined_call_operand.hbm [shape: f32[2,4,512], index: 2, kind: input, shape index: {}]   ;;  %s826_s3 = inlined_call_operand.hbm [shape: f32[2,4,512], index: 3, kind: output, shape index: {}]  }
   0x1   :  { %8 = sst [smem:[#allocation2]] %s824_s1 }
   0x2   :  { %9 = vsyncpa [#allocation4], 0 }
   0x3   :  { %11 = vsyncpa [#allocation4 + $0x1], 0 }
   0x4   :  { %12 = vsyncpa [#allocation7], 0 }
   0x5   :  { %14 = vsyncpa [#allocation7 + $0x1], 0 }
   0x6   :  { %15 = vsyncpa [#allocation5], 0 }
   0x7   :  { %17 = vsyncpa [#allocation5 + $0x1], 0  ;;  %s685_s14 = smov 0   ;;  %s687_s15 = smov 0  }
   0x8   :  { %s689_s16 = smov 0   ;;  %s691_s17 = smov 0  }
   0x9   :  { %s693_s18 = smov 0   ;;  %s695_s19 = smov 0  }
   0xa LB: > { %s427_s1 = sadd.s32 4294967295, %s660_s19   ;;  %s428_s20 = sadd.s32 4294967294, %s660_s19   ;;  %s660_s19 = sphi %s695_s19, %s23_s19   ;;  %s656_s18 = sphi %s693_s18, %s836_s18   ;;  %s652_s17 = sphi %s691_s17, %s835_s17   ;;  %s648_s16 = sphi %s689_s16, %s834_s16   ;;  %s644_s15 = sphi %s687_s15, %s833_s15   ;;  %s640_s14 = sphi %s685_s14, %s832_s14  }
   0xb   : > { %s42_s21 = sadd.s32 1, %s656_s18  ;;  %s51_s22 = sadd.s32 1, %s648_s16 }
   0xc   : > { %p44_p0 = scmp.ge.s32.totalorder %s42_s21, 2  ;;  %p58_p1 = scmp.ne.s32.totalorder %s648_s16, %s644_s15 }
   0xd   : > { %p59_p2 = scmp.eq.s32.totalorder %s660_s19, 0  ;;  %p64_p3 = scmp.ne.s32.totalorder %s644_s15, %s640_s14 }
   0xe   : > { %s838_s21 = smov (%p44_p0, %s42_s21), 0  ;;  %p65_p5 = scmp.eq.s32.totalorder %s427_s1, 0 }
   0xf   : > { %p726_p4 = por %p59_p2, %p58_p1  ;;  %s46_s24 = ssub.s32 %s656_s18, %s838_s21 }
  0x10   : > { %p143_p6 = scmp.eq.s32.totalorder %s427_s1, 1  ;;  %p49_p7 = scmp.eq.s32.totalorder %s46_s24, 0 }
  0x11   : > { %p732_p8 = por %p65_p5, %p64_p3  ;;  %p149_p10 = scmp.eq.s32.totalorder %s428_s20, 1 }
  0x12   : > { %p736_p9 = por %p143_p6, %p58_p1  ;;  %p430_p12 = scmp.ge.s32.totalorder %s660_s19, 2 }
  0x13   : > { %s741_s27 = scalar_select %p49_p7, %s648_s16, %s51_s22  }
  0x14   : > { %p743_p11 = por %p149_p10, %p64_p3  ;;  %p464_p13 = scmp.lt.s32.totalorder %s660_s19, 2 }
  0x15   : > { %s172_s29 = sand.u32 1, %s648_s16   ;;  %s432_s4 = sshll.u32 %s656_s18, 2 }
  0x16   : > { %s431_s30 = sshll.u32 %s172_s29, 2  ;;  %s182_s7 = scalar_lea.hbm %s823_s0, %s432_s4 }
  0x17   : > { %s176_s8 = scalar_lea.vmem [#allocation3], %s431_s30  ;;  %s184_s10 = sshll.u32 %s182_s7, 4  ;;  %s185_s10 = int_to_ptr.hbm [resolvable:$true] %s184_s10 }
  0x18   : > { %s186_s9 = sshll.u32 %s176_s8, 4  ;;  %p756_p0 = pnand %p464_p13, %p726_p4  ;;  %s187_s9 = int_to_ptr.vmem [resolvable:$true] %s186_s9 }
  0x19   : > { %p436_p1 = scmp.ge.s32.totalorder %s660_s19, 1  ;;  %p215_p2 = scmp.lt.s32.totalorder %s660_s19, 3 }
  0x1a   : > { %s173_s12 = scalar_lea.sflag [#allocation4], %s172_s29  ;;  %s433_s13 = sshll.u32 %s172_s29, 4 }
  0x1b   : > { %456 = dma.hbm_to_vmem [thread:$0]  (!%p756_p0), %s185_s10, 64, %s187_s9, %s173_s12  }
  0x1c   : > { %p216_p3 = pnand %p436_p1, %p215_p2  ;;  %s445_s1 = sshll.u32 %s656_s18, 4 }
  0x1d   : > { %s206_s24 = scalar_lea.hbm %s825_s2, %s445_s1  ;;  %s197_s30 = scalar_lea.vmem [#allocation6], %s433_s13 }
  0x1e   : > { %s210_s23 = sshll.u32 %s197_s30, 4  ;;  %s208_s4 = sshll.u32 %s206_s24, 4  ;;  %s211_s23 = int_to_ptr.vmem [resolvable:$true] %s210_s23  ;;  %s209_s4 = int_to_ptr.hbm [resolvable:$true] %s208_s4 }
  0x1f   : > { %s194_s5 = scalar_lea.sflag [#allocation7], %s172_s29  ;;  %219 = sbr.rel (%p216_p3) target bundleno = 60 (0x3c), region = 32 }
  0x20   : > { %459 = dma.hbm_to_vmem [thread:$0]  (!%p756_p0), %s209_s4, 256, %s211_s23, %s194_s5  }
  0x21   : > { %s771_s6 = sand.u32 (!%p216_p3), 1, %s644_s15  }
  0x22   : > { %s437_s7 = sshll.u32 (!%p216_p3), %s771_s6, 2  ;;  %s222_s8 = scalar_lea.sflag (!%p216_p3), [#allocation4], %s771_s6 }
  0x23   : > { %s225_s9 = scalar_lea.vmem (!%p216_p3), [#allocation3], %s437_s7 }
  0x24   : > { %627 = dma.done.wait (%p732_p8), %s222_s8, 64  }
  0x25   : > { %629 = vsyncadd (%p732_p8), %s222_s8, 4294967232  ;;  %s438_s29 = sshll.u32 %s771_s6, 4  ;;  %s232_s10 = scalar_lea.sflag [#allocation7], %s771_s6 }
  0x26   : > { %s235_s11 = scalar_lea.vmem [#allocation6], %s438_s29 }
  0x27   : > { %631 = dma.done.wait (%p732_p8), %s232_s10, 256  }
  0x28   : > { %633 = vsyncadd (%p732_p8), %s232_s10, 4294967040  ;;  %s267_s12 = sld [smem:[#allocation2]]  ;;  %v268_v0 = vld [vmem:[%s225_s9] sm:$0xf]  ;;  %s446_s13 = sshll.u32 %s652_s17, 4  ;;  %vm281_vm0 = vcmask 1043456  }
  0x29   : > { %v269_v2 = vsub.f32 1.0, %v268_v0  ;;  %s306_s22 = scalar_lea.hbm %s826_s3, %s446_s13  ;;  %v272_v8 = vld [vmem:[%s235_s11] sm:$0xff]  ;;  %v273_v10 = vld [vmem:[%s235_s11 + $0x8] sm:$0xff]  ;;  %s263_s25 = scalar_lea.vmem [#allocation8], %s438_s29 }
  0x2a   : > { %s308_s24 = sshll.u32 %s263_s25, 4  ;;  %s310_s30 = sshll.u32 %s306_s22, 4  ;;  %s309_s24 = int_to_ptr.vmem [resolvable:$true] %s308_s24  ;;  %s311_s30 = int_to_ptr.hbm [resolvable:$true] %s310_s30 }
  0x2b   : > { %s291_s17 = scalar_lea.sflag [#allocation5], %s771_s6  ;;  %s588_s23 = sshra.s32 %s311_s30, 4  ;;  %s589_s23 = int_to_ptr.hbm [resolvable:$true] %s588_s23 }
  0x2c   : > { %s590_s4 = scalar_lea.hbm %s589_s23, 16  ;;  %s594_s8 = scalar_lea.hbm %s826_s3, 32 }
  0x2d   : > { %p591_p4 = scmp.ne.s32.totalorder %s589_s23, %s590_s4  ;;  %p595_p7 = scmp.lt.s32.totalorder %s589_s23, %s826_s3 }
  0x2e   : > { %v270_v1 = vstv %s267_s12  ;;  %p596_p8 = scmp.lt.s32.totalorder %s594_s8, %s590_s4 }
  0x2f   : > { %v271_v3 = vmul.f32 %v270_v1, %v269_v2  ;;  %p592_p5 = pnand %p591_p4, %p736_p9 }
  0x30   : > { %p597_p10 = por %p596_p8, %p595_p7 }
  0x31   : > { %v275_v4 = vperm.slane %v271_v3, 0  ;;  %v276_v5 = vperm.slane %v271_v3, 1  ;;  %v277_v6 = vperm.slane %v271_v3, 2  ;;  %v278_v7 = vperm.slane %v271_v3, 3  ;;  %p593_p6 = pneg %p592_p5 }
  0x33   : > { %v279_v9 = vrot.slane %v276_v5, 4  ;;  %v280_v11 = vrot.slane %v278_v7, 4  ;;  %p598_p13 = pnand %p597_p10, %p593_p6 }
  0x35   : > { %v282_v12 = vsel %vm281_vm0, %v275_v4, %v279_v9  ;;  %v283_v13 = vsel %vm281_vm0, %v277_v6, %v280_v11 }
  0x36   : > { %v286_v14 = vmul.f32 %v282_v12, %v272_v8  ;;  %v287_v15 = vmul.f32 %v283_v13, %v273_v10 }
  0x38   : > { %288 = vst [vmem:[%s263_s25] sm:$0xff] %v286_v14 }
  0x39   : > { %289 = vst [vmem:[%s263_s25 + $0x8] sm:$0xff] %v287_v15 }
  0x3a   : > { %601 = shalt.err (!%p598_p13)
}
  0x3b   : > { %451 = dma.vmem_to_hbm [thread:$0]  (%p736_p9), %s309_s24, 256, %s311_s30, %s291_s17  }
  0x3c PF: > { %s322_s6 = sand.u32 1, %s640_s14   ;;  %p461_p0 = pnand %p430_p12, %p743_p11 }
  0x3d   : > { %s323_s10 = scalar_lea.sflag [#allocation5], %s322_s6 }
  0x3e   : > { %p462_p1 = pneg %p461_p0 }
  0x40   : > { %635 = dma.done.wait (%p462_p1), %s323_s10, 256  }
  0x41   : > { %637 = vsyncadd (%p462_p1), %s323_s10, 4294967040  ;;  %s23_s19 = sadd.s32 1, %s660_s19   ;;  %s832_s14 = smov %s644_s15 }
  0x42   : > { %p20_p2 = scmp.ge.s32.totalorder %s23_s19, 4   ;;  %s833_s15 = smov %s648_s16 }
  0x43   : > { %s834_s16 = smov %s741_s27  ;;  %s835_s17 = smov %s656_s18 }
  0x44   : > { %s836_s18 = smov %s838_s21  ;;  %22 = sbr.rel (!%p20_p2) target bundleno = 10 (0xa), region = 90 }
  0x49   :  { %329 = vsyncpa [#allocation4], 1 }
  0x4a   :  { %331 = vsyncpa [#allocation4 + $0x1], 1 }
  0x4b   :  { %332 = vsyncpa [#allocation7], 1 }
  0x4c   :  { %334 = vsyncpa [#allocation7 + $0x1], 1 }
  0x4d   :  { %335 = vsyncpa [#allocation5], 1 }
  0x4e   :  { %337 = vsyncpa [#allocation5 + $0x1], 1 }

</bundles_post_ra>
